<compile_context>
chip_gen: v5e
topology: v5e:2x2
jax: 0.10.0
libtpu: 0.0.40
codegen_flags: <defaults>
</compile_context>

<pallas_src>
import jax
import jax.numpy as jnp
from jax.experimental import pallas as pl
from jax.experimental.pallas import tpu as pltpu


def _attn_general_kernel(xes_ref, hid_ref, enc_ref, mask_ref,
                         w_attn_t_ref, w_comb_x_ref, w_comb_a_ref,
                         out_ref,
                         hid_sc, m_sc, l_sc, acc_sc):
    f32 = jnp.float32
    s_idx = pl.program_id(1)

    @pl.when(s_idx == 0)
    def _():
        # hid = last_hidden @ W_attn^T : (Bt, H) @ (H, D) -> (Bt, D)   [MXU]
        hid_sc[...] = jnp.dot(hid_ref[...], w_attn_t_ref[...],
                              preferred_element_type=f32)
        m_sc[...] = jnp.full(m_sc.shape, -jnp.inf, dtype=m_sc.dtype)
        l_sc[...] = jnp.zeros(l_sc.shape, dtype=l_sc.dtype)
        acc_sc[...] = jnp.zeros(acc_sc.shape, dtype=acc_sc.dtype)

    enc = enc_ref[...]                                        # (Bt, tS, D)

    # attn_w_premask chunk: batched q=1 matmul on the MXU (enc.T never materialized),
    # squeezed to (Bt, tS) so the softmax chain runs at full vreg density.
    hid_q = hid_sc[...].astype(enc.dtype)[:, None, :]         # (Bt, 1, D)
    scores = jnp.einsum("bqd,bsd->bqs", hid_q, enc,
                        preferred_element_type=f32)[:, 0, :]  # (Bt, tS)
    # attn_w_premask -= (1 - attn_mask) * 1e20
    scores = scores - (1.0 - mask_ref[...].astype(f32)) * 1e20

    # online (flash-style) softmax update over the S axis
    m_prev = m_sc[...]                                        # (Bt, 1)
    m_new = jnp.maximum(m_prev, jnp.max(scores, axis=-1, keepdims=True))
    alpha = jnp.exp(m_prev - m_new)
    p = jnp.exp(scores - m_new)                               # (Bt, tS)
    l_sc[...] = alpha * l_sc[...] + jnp.sum(p, axis=-1, keepdims=True)
    part = jnp.einsum("bqs,bsd->bqd", p.astype(enc.dtype)[:, None, :], enc,
                      preferred_element_type=f32)[:, 0, :]    # (Bt, D)
    acc_sc[...] = alpha * acc_sc[...] + part
    m_sc[...] = m_new

    @pl.when(s_idx == pl.num_programs(1) - 1)
    def _():
        denom = l_sc[...]
        r = pl.reciprocal(denom, approx=True)                 # EUP slot
        r = r * (2.0 - denom * r)                             # one Newton step
        applied = acc_sc[...] * r                             # (Bt, D)
        # output = tanh(cat(xes, attn_applied) @ W_combine^T), concat eliminated
        out = jnp.tanh(
            jnp.dot(xes_ref[...], w_comb_x_ref[...], preferred_element_type=f32)
            + jnp.dot(applied, w_comb_a_ref[...], preferred_element_type=f32))
        out_ref[...] = out.astype(out_ref.dtype)


def _tile_footprint_bytes(block_b, block_s, H, D, E, enc_bytes, io_bytes):
    """Approximate VMEM footprint of one grid step: double-buffered I/O tiles,
    single-buffered weights, plus scratch (with lane padding to 128)."""
    lane = lambda n: max(n, 128)
    enc = 2 * block_b * block_s * lane(D) * enc_bytes
    msk = 2 * block_b * lane(block_s) * 4
    xes = 2 * block_b * lane(E) * io_bytes
    hid = 2 * block_b * lane(H) * io_bytes
    out = 2 * block_b * lane(E) * io_bytes
    wts = (H * lane(D) + E * lane(E) + D * lane(E)) * 4       # Buffered(1)
    scr = 2 * block_b * lane(D) * 4 + 2 * block_b * 128 * 4   # hid/acc + m/l
    return enc + msk + xes + hid + out + wts + scr


def _pick_tiles(B, S, H, D, E, enc_bytes, io_bytes):
    """VMEM-aware tile selection (works on v5e/v6e 128 MiB and v7x 64 MiB)."""
    try:
        cap = int(pltpu.get_tpu_info().vmem_capacity_bytes)
    except Exception:
        cap = 64 * 1024 * 1024            # conservative fallback (v7x per-core VMEM)
    budget = int(0.70 * cap)

    if B % 8 == 0:
        bb_cands = [c for c in (256, 128, 64, 32, 16, 8) if B % c == 0] or [B]
    else:
        bb_cands = [B]                     # (8,128) rule: span the full batch dim

    if S % 128 == 0:
        bs_cands = [c for c in (512, 256, 128) if S % c == 0] or [S]
    else:
        bs_cands = [S]                     # no clean 128-multiple split; take full axis

    fits = [(bb, bs) for bb in bb_cands for bs in bs_cands
            if _tile_footprint_bytes(bb, bs, H, D, E, enc_bytes, io_bytes) <= budget]
    if not fits:
        fits = [(min(bb_cands), min(bs_cands))]

    def rank(cfg):
        bb, bs = cfg
        gb = B // bb
        even_steps = 1 if (gb >= 2 and gb % 2 == 0) else 0     # v7x megacore balance
        return (even_steps, bb, bs)

    block_b, block_s = max(fits, key=rank)
    fp = _tile_footprint_bytes(block_b, block_s, H, D, E, enc_bytes, io_bytes)
    vmem_limit = min(int(0.92 * cap), max(int(1.4 * fp), 32 * 1024 * 1024))
    return block_b, block_s, vmem_limit


def attention_layer_general(xes, hidden, enc_out, attn_mask, w_attn, w_combine,
                            *, enc_dtype=None, block_b=None, block_s=None):
    """Pallas implementation of AttentionLayer.forward (attn_type='general',
    attn_time='pre', bidirectional=False, bias-free Linears)."""
    B, one, E = xes.shape
    assert one == 1
    L, Bh, H = hidden.shape
    assert Bh == B
    S, D = enc_out.shape[1], enc_out.shape[2]
    assert w_attn.shape == (D, H)
    assert w_combine.shape == (E, E + D)

    if enc_dtype is not None:              # optional bf16 streaming of enc_out
        enc_out = enc_out.astype(enc_dtype)
    enc_bytes = jnp.dtype(enc_out.dtype).itemsize
    io_bytes = jnp.dtype(xes.dtype).itemsize

    auto_bb, auto_bs, vmem_limit = _pick_tiles(B, S, H, D, E, enc_bytes, io_bytes)
    block_b = auto_bb if block_b is None else block_b
    block_s = auto_bs if block_s is None else block_s
    assert B % block_b == 0 and S % block_s == 0
    grid_b, grid_s = B // block_b, S // block_s

    # One-time weight prep: transpose torch (out,in) -> (in,out) and split
    # attn_combine into its xes / attn_applied halves (removes in-kernel concat).
    w_attn_t = jnp.transpose(w_attn)              # (H, D)
    w_comb_x = jnp.transpose(w_combine[:, :E])    # (E, E)  -> multiplies xes
    w_comb_a = jnp.transpose(w_combine[:, E:])    # (D, E)  -> multiplies attn_applied

    xes2 = xes[:, 0, :]                            # (B, E)
    mask2 = attn_mask.astype(jnp.float32)          # (B, S)

    cost = pl.CostEstimate(
        flops=2 * B * (H * D + 2 * S * D + (E + D) * E),
        transcendentals=B * (S + E),
        bytes_accessed=(enc_out.size * enc_bytes + xes2.size * io_bytes
                        + B * H * io_bytes + mask2.size * 4
                        + (H * D + E * E + D * E) * 4 + B * E * io_bytes))

    out2 = pl.pallas_call(
        _attn_general_kernel,
        out_shape=jax.ShapeDtypeStruct((B, E), xes.dtype),
        grid=(grid_b, grid_s),
        in_specs=[
            pl.BlockSpec((block_b, E), lambda b, s: (b, 0)),                       # xes
            pl.BlockSpec((pl.Squeezed(), block_b, H), lambda b, s: (L - 1, b, 0)), # hidden[-1]
            pl.BlockSpec((block_b, block_s, D), lambda b, s: (b, s, 0)),           # enc_out
            pl.BlockSpec((block_b, block_s), lambda b, s: (b, s)),                 # attn_mask
            pl.BlockSpec((H, D), lambda b, s: (0, 0),
                         pipeline_mode=pl.Buffered(1)),                            # W_attn^T
            pl.BlockSpec((E, E), lambda b, s: (0, 0),
                         pipeline_mode=pl.Buffered(1)),                            # W_comb (xes)
            pl.BlockSpec((D, E), lambda b, s: (0, 0),
                         pipeline_mode=pl.Buffered(1)),                            # W_comb (applied)
        ],
        out_specs=pl.BlockSpec((block_b, E), lambda b, s: (b, 0)),
        scratch_shapes=[
            pltpu.VMEM((block_b, D), jnp.float32),   # hid_sc
            pltpu.VMEM((block_b, 1), jnp.float32),   # m_sc (running max)
            pltpu.VMEM((block_b, 1), jnp.float32),   # l_sc (running denom)
            pltpu.VMEM((block_b, D), jnp.float32),   # acc_sc (running numerator)
        ],
        compiler_params=pltpu.CompilerParams(
            dimension_semantics=("parallel", "arbitrary"),
            vmem_limit_bytes=vmem_limit),
        cost_estimate=cost,
    )(xes2, hidden, enc_out, mask2, w_attn_t, w_comb_x, w_comb_a)

    return out2[:, None, :]                        # (B, 1, E)


def _reference(xes, hidden, enc_out, attn_mask, w_attn, w_combine):
    """Pure-JAX reference mirroring the PyTorch forward ('general', attn_time='pre')."""
    last_hidden = hidden[-1]                                    # (B, H)
    hid = last_hidden @ w_attn.T                                # (B, D)
    scores = jnp.einsum("bd,bsd->bs", hid, enc_out)             # (B, S)
    scores = scores - (1.0 - attn_mask) * 1e20
    attn_w = jax.nn.softmax(scores, axis=1)                     # (B, S)
    applied = jnp.einsum("bs,bsd->bd", attn_w, enc_out)         # (B, D)
    merged = jnp.concatenate([xes[:, 0, :], applied], axis=1)   # (B, E+D)
    return jnp.tanh(merged @ w_combine.T)[:, None, :]           # (B, 1, E)


if __name__ == "__main__":
    # small shapes: batch=16 (-> 2 batch grid steps of 8), seq=8, hidden=emb=32, 2 layers
    B, S, H, E, L = 16, 8, 32, 32, 2
    D = H  # hszXdirs with bidirectional=False

    key = jax.random.PRNGKey(0)
    k1, k2, k3, k4, k5 = jax.random.split(key, 5)

    xes = jax.random.normal(k1, (B, 1, E), dtype=jnp.float32)
    hidden = jax.random.normal(k2, (L, B, H), dtype=jnp.float32)
    enc_out = jax.random.normal(k3, (B, S, D), dtype=jnp.float32)
    # mask: a few positions masked out, everything else visible
    attn_mask = jnp.ones((B, S), dtype=jnp.float32)
    attn_mask = attn_mask.at[1, -1].set(0.0).at[3, 5:].set(0.0)

    # deterministic parameter init (torch Linear: W ~ U(-1/sqrt(in), 1/sqrt(in)))
    w_attn = jax.random.uniform(k4, (D, H), jnp.float32,
                                minval=-1.0 / jnp.sqrt(H), maxval=1.0 / jnp.sqrt(H))
    w_combine = jax.random.uniform(k5, (E, E + D), jnp.float32,
                                   minval=-1.0 / jnp.sqrt(E + D),
                                   maxval=1.0 / jnp.sqrt(E + D))

    out = attention_layer_general(xes, hidden, enc_out, attn_mask, w_attn, w_combine)
    out = jax.block_until_ready(out)

    ref = _reference(xes, hidden, enc_out, attn_mask, w_attn, w_combine)
    assert out.shape == (B, 1, E)
    assert jnp.allclose(out, ref, atol=1e-4, rtol=1e-4), "mismatch vs reference"

    print("KERNEL_OK")
</pallas_src>

<mosaic_0001>
module attributes {stable_mosaic.version = 11 : i64} {
  func.func @_attn_general_kernel(%arg0: i32, %arg1: i32, %arg2: memref<8x32xf32, #tpu.memory_space<vmem>>, %arg3: memref<1x8x32xf32, #tpu.memory_space<vmem>>, %arg4: memref<8x8x32xf32, #tpu.memory_space<vmem>>, %arg5: memref<8x8xf32, #tpu.memory_space<vmem>>, %arg6: memref<32x32xf32, #tpu.memory_space<vmem>>, %arg7: memref<32x32xf32, #tpu.memory_space<vmem>>, %arg8: memref<32x32xf32, #tpu.memory_space<vmem>>, %arg9: memref<8x32xf32, #tpu.memory_space<vmem>>, %arg10: memref<8x32xf32, #tpu.memory_space<vmem>>, %arg11: memref<8x1xf32, #tpu.memory_space<vmem>>, %arg12: memref<8x1xf32, #tpu.memory_space<vmem>>, %arg13: memref<8x32xf32, #tpu.memory_space<vmem>>) attributes {dimension_semantics = [#tpu.dimension_semantics<parallel>, #tpu.dimension_semantics<arbitrary>], iteration_bounds = array<i64: 2, 1>, scalar_prefetch = 0 : i64, scratch_operands = 4 : i64, tpu.core_type = #tpu.core_type<tc>, window_params = [{transform_indices = @transform_0, window_bounds = array<i64: 8, 32>}, {transform_indices = @transform_1, window_bounds = array<i64: 1, 8, 32>}, {transform_indices = @transform_2, window_bounds = array<i64: 8, 8, 32>}, {transform_indices = @transform_3, window_bounds = array<i64: 8, 8>}, {pipeline_mode = #tpu.pipeline_mode<synchronous>, transform_indices = @transform_4, window_bounds = array<i64: 32, 32>}, {pipeline_mode = #tpu.pipeline_mode<synchronous>, transform_indices = @transform_5, window_bounds = array<i64: 32, 32>}, {pipeline_mode = #tpu.pipeline_mode<synchronous>, transform_indices = @transform_6, window_bounds = array<i64: 32, 32>}, {transform_indices = @transform_7, window_bounds = array<i64: 8, 32>}]} {
    %c0_i32 = arith.constant 0 : i32
    %0 = arith.cmpi eq, %arg1, %c0_i32 : i32
    %1 = arith.extui %0 : i1 to i32
    %c0_i32_0 = arith.constant 0 : i32
    %2 = arith.cmpi ne, %1, %c0_i32_0 : i32
    scf.if %2 {
      %c0_26 = arith.constant 0 : index
      %c0_27 = arith.constant 0 : index
      %c0_28 = arith.constant 0 : index
      %41 = vector.load %arg3[%c0_26, %c0_27, %c0_28] : memref<1x8x32xf32, #tpu.memory_space<vmem>>, vector<1x8x32xf32>
      %42 = vector.shape_cast %41 : vector<1x8x32xf32> to vector<8x32xf32>
      %c0_29 = arith.constant 0 : index
      %c0_30 = arith.constant 0 : index
      %43 = vector.load %arg6[%c0_29, %c0_30] : memref<32x32xf32, #tpu.memory_space<vmem>>, vector<32x32xf32>
      %cst_31 = arith.constant dense<0.000000e+00> : vector<8x32xf32>
      %44 = tpu.matmul %42, %43, %cst_31 {dimension_numbers = #tpu.dot_dimension_numbers<[1], [0], [0], [1], [0, 0, 1, 1], [], []>} : vector<8x32xf32>, vector<32x32xf32>, vector<8x32xf32> -> vector<8x32xf32>
      %c0_32 = arith.constant 0 : index
      %c0_33 = arith.constant 0 : index
      %45 = vector.load %arg10[%c0_32, %c0_33] : memref<8x32xf32, #tpu.memory_space<vmem>>, vector<8x32xf32>
      tpu.vector_store %arg10[%c0_32, %c0_33], %44 {strides = array<i32>} : memref<8x32xf32, #tpu.memory_space<vmem>>, vector<8x32xf32>,
      %cst_34 = arith.constant 0xFF800000 : f32
      %46 = vector.broadcast %cst_34 : f32 to vector<8x1xf32>
      %c0_35 = arith.constant 0 : index
      %c0_36 = arith.constant 0 : index
      %47 = vector.load %arg11[%c0_35, %c0_36] : memref<8x1xf32, #tpu.memory_space<vmem>>, vector<8x1xf32>
      tpu.vector_store %arg11[%c0_35, %c0_36], %46 {strides = array<i32>} : memref<8x1xf32, #tpu.memory_space<vmem>>, vector<8x1xf32>,
      %cst_37 = arith.constant 0.000000e+00 : f32
      %48 = vector.broadcast %cst_37 : f32 to vector<8x1xf32>
      %c0_38 = arith.constant 0 : index
      %c0_39 = arith.constant 0 : index
      %49 = vector.load %arg12[%c0_38, %c0_39] : memref<8x1xf32, #tpu.memory_space<vmem>>, vector<8x1xf32>
      tpu.vector_store %arg12[%c0_38, %c0_39], %48 {strides = array<i32>} : memref<8x1xf32, #tpu.memory_space<vmem>>, vector<8x1xf32>,
      %cst_40 = arith.constant 0.000000e+00 : f32
      %50 = vector.broadcast %cst_40 : f32 to vector<8x32xf32>
      %c0_41 = arith.constant 0 : index
      %c0_42 = arith.constant 0 : index
      %51 = vector.load %arg13[%c0_41, %c0_42] : memref<8x32xf32, #tpu.memory_space<vmem>>, vector<8x32xf32>
      tpu.vector_store %arg13[%c0_41, %c0_42], %50 {strides = array<i32>} : memref<8x32xf32, #tpu.memory_space<vmem>>, vector<8x32xf32>,
    } else {
    }
    %c0 = arith.constant 0 : index
    %c0_1 = arith.constant 0 : index
    %c0_2 = arith.constant 0 : index
    %3 = vector.load %arg4[%c0, %c0_1, %c0_2] : memref<8x8x32xf32, #tpu.memory_space<vmem>>, vector<8x8x32xf32>
    %c0_3 = arith.constant 0 : index
    %c0_4 = arith.constant 0 : index
    %4 = vector.load %arg10[%c0_3, %c0_4] : memref<8x32xf32, #tpu.memory_space<vmem>>, vector<8x32xf32>
    %5 = vector.shape_cast %4 : vector<8x32xf32> to vector<8x1x32xf32>
    "tpu.trace_start"() <{level = 10 : i32, message = "bqd,bsd->bqs"}> : () -> ()
    %cst = arith.constant dense<0.000000e+00> : vector<8x1x8xf32>
    %6 = tpu.matmul %5, %3, %cst {dimension_numbers = #tpu.dot_dimension_numbers<[2], [2], [1], [1], [0, 0, 0, 1, 1, 1], [0], [0]>} : vector<8x1x32xf32>, vector<8x8x32xf32>, vector<8x1x8xf32> -> vector<8x1x8xf32>
    "tpu.trace_stop"() : () -> ()
    %7 = vector.shape_cast %6 : vector<8x1x8xf32> to vector<8x8xf32>
    %c0_5 = arith.constant 0 : index
    %c0_6 = arith.constant 0 : index
    %8 = vector.load %arg5[%c0_5, %c0_6] : memref<8x8xf32, #tpu.memory_space<vmem>>, vector<8x8xf32>
    %cst_7 = arith.constant 1.000000e+00 : f32
    %9 = vector.broadcast %cst_7 : f32 to vector<8x8xf32>
    %10 = arith.subf %9, %8 : vector<8x8xf32>
    %cst_8 = arith.constant 1.000000e+20 : f32
    %11 = vector.broadcast %cst_8 : f32 to vector<8x8xf32>
    %12 = arith.mulf %10, %11 : vector<8x8xf32>
    %13 = arith.subf %7, %12 : vector<8x8xf32>
    %c0_9 = arith.constant 0 : index
    %c0_10 = arith.constant 0 : index
    %14 = vector.load %arg11[%c0_9, %c0_10] : memref<8x1xf32, #tpu.memory_space<vmem>>, vector<8x1xf32>
    %cst_11 = arith.constant dense<0xFF800000> : vector<8xf32>
    %15 = vector.multi_reduction <maximumf>, %13, %cst_11 [1] : vector<8x8xf32> to vector<8xf32>
    %16 = vector.shape_cast %15 : vector<8xf32> to vector<8x1xf32>
    %17 = arith.maximumf %14, %16 : vector<8x1xf32>
    %18 = arith.subf %14, %17 : vector<8x1xf32>
    %19 = math.exp %18 : vector<8x1xf32>
    %20 = vector.broadcast %17 : vector<8x1xf32> to vector<8x8xf32>
    %21 = arith.subf %13, %20 : vector<8x8xf32>
    %22 = math.exp %21 : vector<8x8xf32>
    %c0_12 = arith.constant 0 : index
    %c0_13 = arith.constant 0 : index
    %23 = vector.load %arg12[%c0_12, %c0_13] : memref<8x1xf32, #tpu.memory_space<vmem>>, vector<8x1xf32>
    %24 = arith.mulf %19, %23 : vector<8x1xf32>
    %cst_14 = arith.constant dense<0.000000e+00> : vector<8xf32>
    %25 = vector.multi_reduction <add>, %22, %cst_14 [1] : vector<8x8xf32> to vector<8xf32>
    %26 = vector.shape_cast %25 : vector<8xf32> to vector<8x1xf32>
    %27 = arith.addf %24, %26 : vector<8x1xf32>
    %c0_15 = arith.constant 0 : index
    %c0_16 = arith.constant 0 : index
    %28 = vector.load %arg12[%c0_15, %c0_16] : memref<8x1xf32, #tpu.memory_space<vmem>>, vector<8x1xf32>
    tpu.vector_store %arg12[%c0_15, %c0_16], %27 {strides = array<i32>} : memref<8x1xf32, #tpu.memory_space<vmem>>, vector<8x1xf32>,
    %29 = vector.shape_cast %22 : vector<8x8xf32> to vector<8x1x8xf32>
    "tpu.trace_start"() <{level = 10 : i32, message = "bqs,bsd->bqd"}> : () -> ()
    %cst_17 = arith.constant dense<0.000000e+00> : vector<8x1x32xf32>
    %30 = tpu.matmul %29, %3, %cst_17 {dimension_numbers = #tpu.dot_dimension_numbers<[2], [1], [1], [2], [0, 0, 0, 1, 1, 2], [0], [0]>} : vector<8x1x8xf32>, vector<8x8x32xf32>, vector<8x1x32xf32> -> vector<8x1x32xf32>
    "tpu.trace_stop"() : () -> ()
    %31 = vector.shape_cast %30 : vector<8x1x32xf32> to vector<8x32xf32>
    %c0_18 = arith.constant 0 : index
    %c0_19 = arith.constant 0 : index
    %32 = vector.load %arg13[%c0_18, %c0_19] : memref<8x32xf32, #tpu.memory_space<vmem>>, vector<8x32xf32>
    %33 = vector.broadcast %19 : vector<8x1xf32> to vector<8x32xf32>
    %34 = arith.mulf %33, %32 : vector<8x32xf32>
    %35 = arith.addf %34, %31 : vector<8x32xf32>
    %c0_20 = arith.constant 0 : index
    %c0_21 = arith.constant 0 : index
    %36 = vector.load %arg13[%c0_20, %c0_21] : memref<8x32xf32, #tpu.memory_space<vmem>>, vector<8x32xf32>
    tpu.vector_store %arg13[%c0_20, %c0_21], %35 {strides = array<i32>} : memref<8x32xf32, #tpu.memory_space<vmem>>, vector<8x32xf32>,
    %c0_22 = arith.constant 0 : index
    %c0_23 = arith.constant 0 : index
    %37 = vector.load %arg11[%c0_22, %c0_23] : memref<8x1xf32, #tpu.memory_space<vmem>>, vector<8x1xf32>
    tpu.vector_store %arg11[%c0_22, %c0_23], %17 {strides = array<i32>} : memref<8x1xf32, #tpu.memory_space<vmem>>, vector<8x1xf32>,
    %c0_i32_24 = arith.constant 0 : i32
    %38 = arith.cmpi eq, %arg1, %c0_i32_24 : i32
    %39 = arith.extui %38 : i1 to i32
    %c0_i32_25 = arith.constant 0 : i32
    %40 = arith.cmpi ne, %39, %c0_i32_25 : i32
    scf.if %40 {
      %c0_26 = arith.constant 0 : index
      %c0_27 = arith.constant 0 : index
      %41 = vector.load %arg12[%c0_26, %c0_27] : memref<8x1xf32, #tpu.memory_space<vmem>>, vector<8x1xf32>
      %42 = tpu.reciprocal %41 {approx = true} : vector<8x1xf32> -> vector<8x1xf32>
      %43 = arith.mulf %41, %42 : vector<8x1xf32>
      %cst_28 = arith.constant 2.000000e+00 : f32
      %44 = vector.broadcast %cst_28 : f32 to vector<8x1xf32>
      %45 = arith.subf %44, %43 : vector<8x1xf32>
      %46 = arith.mulf %42, %45 : vector<8x1xf32>
      %c0_29 = arith.constant 0 : index
      %c0_30 = arith.constant 0 : index
      %47 = vector.load %arg13[%c0_29, %c0_30] : memref<8x32xf32, #tpu.memory_space<vmem>>, vector<8x32xf32>
      %48 = vector.broadcast %46 : vector<8x1xf32> to vector<8x32xf32>
      %49 = arith.mulf %47, %48 : vector<8x32xf32>
      %c0_31 = arith.constant 0 : index
      %c0_32 = arith.constant 0 : index
      %50 = vector.load %arg2[%c0_31, %c0_32] : memref<8x32xf32, #tpu.memory_space<vmem>>, vector<8x32xf32>
      %c0_33 = arith.constant 0 : index
      %c0_34 = arith.constant 0 : index
      %51 = vector.load %arg7[%c0_33, %c0_34] : memref<32x32xf32, #tpu.memory_space<vmem>>, vector<32x32xf32>
      %cst_35 = arith.constant dense<0.000000e+00> : vector<8x32xf32>
      %52 = tpu.matmul %50, %51, %cst_35 {dimension_numbers = #tpu.dot_dimension_numbers<[1], [0], [0], [1], [0, 0, 1, 1], [], []>} : vector<8x32xf32>, vector<32x32xf32>, vector<8x32xf32> -> vector<8x32xf32>
      %c0_36 = arith.constant 0 : index
      %c0_37 = arith.constant 0 : index
      %53 = vector.load %arg8[%c0_36, %c0_37] : memref<32x32xf32, #tpu.memory_space<vmem>>, vector<32x32xf32>
      %cst_38 = arith.constant dense<0.000000e+00> : vector<8x32xf32>
      %54 = tpu.matmul %49, %53, %cst_38 {dimension_numbers = #tpu.dot_dimension_numbers<[1], [0], [0], [1], [0, 0, 1, 1], [], []>} : vector<8x32xf32>, vector<32x32xf32>, vector<8x32xf32> -> vector<8x32xf32>
      %55 = arith.addf %52, %54 : vector<8x32xf32>
      %56 = math.tanh %55 : vector<8x32xf32>
      %c0_39 = arith.constant 0 : index
      %c0_40 = arith.constant 0 : index
      %57 = vector.load %arg9[%c0_39, %c0_40] : memref<8x32xf32, #tpu.memory_space<vmem>>, vector<8x32xf32>
      tpu.vector_store %arg9[%c0_39, %c0_40], %56 {strides = array<i32>} : memref<8x32xf32, #tpu.memory_space<vmem>>, vector<8x32xf32>,
    } else {
    }
    return
  }
  func.func @transform_0(%arg0: i32, %arg1: i32) -> (i32, i32) {
    %c0_i32 = arith.constant 0 : i32
    %c0_i32_0 = arith.constant 0 : i32
    return %arg0, %c0_i32 : i32, i32
  }
  func.func @transform_1(%arg0: i32, %arg1: i32) -> (i32, i32, i32) {
    %c1_i32 = arith.constant 1 : i32
    %c0_i32 = arith.constant 0 : i32
    %c0_i32_0 = arith.constant 0 : i32
    return %c1_i32, %arg0, %c0_i32 : i32, i32, i32
  }
  func.func @transform_2(%arg0: i32, %arg1: i32) -> (i32, i32, i32) {
    %c0_i32 = arith.constant 0 : i32
    %c0_i32_0 = arith.constant 0 : i32
    return %arg0, %arg1, %c0_i32 : i32, i32, i32
  }
  func.func @transform_3(%arg0: i32, %arg1: i32) -> (i32, i32) {
    %c0_i32 = arith.constant 0 : i32
    return %arg0, %arg1 : i32, i32
  }
  func.func @transform_4(%arg0: i32, %arg1: i32) -> (i32, i32) {
    %c0_i32 = arith.constant 0 : i32
    %c0_i32_0 = arith.constant 0 : i32
    %c0_i32_1 = arith.constant 0 : i32
    return %c0_i32, %c0_i32_0 : i32, i32
  }
  func.func @transform_5(%arg0: i32, %arg1: i32) -> (i32, i32) {
    %c0_i32 = arith.constant 0 : i32
    %c0_i32_0 = arith.constant 0 : i32
    %c0_i32_1 = arith.constant 0 : i32
    return %c0_i32, %c0_i32_0 : i32, i32
  }
  func.func @transform_6(%arg0: i32, %arg1: i32) -> (i32, i32) {
    %c0_i32 = arith.constant 0 : i32
    %c0_i32_0 = arith.constant 0 : i32
    %c0_i32_1 = arith.constant 0 : i32
    return %c0_i32, %c0_i32_0 : i32, i32
  }
  func.func @transform_7(%arg0: i32, %arg1: i32) -> (i32, i32) {
    %c0_i32 = arith.constant 0 : i32
    %c0_i32_0 = arith.constant 0 : i32
    return %arg0, %c0_i32 : i32, i32
  }
}

</mosaic_0001>

<bundles_post_ra>
// kernel: tpu_custom_call.1
= control target key start
LH: loop header
LB: loop body
LE: loop exit
PB: predicated region body
PF: predicated region fallthrough
CT: control target
= control target key end

     0   :  { %s2081_s0 = inlined_call_operand.vmem [shape: f32[16,32], index: 0, kind: input, shape index: {}]   ;;  %s2082_s1 = inlined_call_operand.hbm [shape: f32[2,16,32], index: 1, kind: input, shape index: {}]   ;;  %s2083_s2 = inlined_call_operand.hbm [shape: f32[16,8,32], index: 2, kind: input, shape index: {}]   ;;  %s2084_s3 = inlined_call_operand.vmem [shape: f32[16,8], index: 3, kind: input, shape index: {}]   ;;  %s2085_s4 = inlined_call_operand.hbm [shape: f32[32,32], index: 4, kind: input, shape index: {}]   ;;  %s2086_s5 = inlined_call_operand.hbm [shape: f32[32,32], index: 5, kind: input, shape index: {}]   ;;  %s2087_s6 = inlined_call_operand.hbm [shape: f32[32,32], index: 6, kind: input, shape index: {}]   ;;  %s2088_s7 = inlined_call_operand.hbm [shape: f32[16,32], index: 7, kind: output, shape index: {}]  }
   0x1   :  { %2093 = sst [smem:[#allocation24_spill]] %s2082_s1 }
   0x2   :  { %2094 = sst [smem:[#allocation25_spill]] %s2085_s4 }
   0x3   :  { %2095 = sst [smem:[#allocation26_spill]] %s2086_s5 }
   0x4   :  { %2096 = sst [smem:[#allocation27_spill]] %s2087_s6 }
   0x5   :  { %12 = vsyncpa [#allocation7], 0 }
   0x6   :  { %14 = vsyncpa [#allocation7 + $0x1], 0 }
   0x7   :  { %15 = vsyncpa [#allocation10], 0 }
   0x8   :  { %17 = vsyncpa [#allocation10 + $0x1], 0 }
   0x9   :  { %18 = vsyncpa [#allocation13], 0 }
   0xa   :  { %19 = vsyncpa [#allocation8], 0 }
   0xb   :  { %21 = vsyncpa [#allocation8 + $0x1], 0  ;;  %s1776_s24 = smov 0   ;;  %s1778_s25 = smov 0  }
   0xc   :  { %s1780_s26 = smov 0   ;;  %s1782_s27 = smov 0  }
   0xd   :  { %s1784_s28 = smov 0   ;;  %s1786_s29 = smov 0  }
   0xe LB: > { %2097 = sst [smem:[#allocation21_spill]] %s1714_s26  ;;  %s1807_s30 = sadd.s32 4294967295, %s1726_s29   ;;  %s1726_s29 = sphi %s1786_s29, %s27_s29   ;;  %s1722_s28 = sphi %s1784_s28, %s2119_s28   ;;  %s1718_s27 = sphi %s1782_s27, %s2118_s27   ;;  %s1714_s26 = sphi %s1780_s26, %s2114_s26   ;;  %s1710_s25 = sphi %s1778_s25, %s2117_s25   ;;  %s1706_s24 = sphi %s1776_s24, %s2116_s24  }
   0xf   : > { %p1303_p0 = scmp.ge.s32.totalorder %s1726_s29, 1  ;;  %p86_p1 = scmp.eq.s32.totalorder %s1807_s30, 0 }
  0x10   : > { %p241_p2 = scmp.lt.s32.totalorder %s1726_s29, 3  ;;  %s2098_s4 = sld [smem:[#allocation25_spill]] }
  0x11   : > { %s1728_s12 = smov [#allocation11]   ;;  %p1307_p6 = scmp.ge.s32.totalorder %s1726_s29, 2 }
  0x12   : > { %p1815_p3 = pnand %p1303_p0, %p241_p2  ;;  %s254_s13 = sshll.u32 %s1728_s12, 4  ;;  %s255_s13 = int_to_ptr.vmem [resolvable:$true] %s254_s13 }
  0x13   : > { %s2101_s5 = sld [smem:[#allocation26_spill]]  ;;  %s2089_s18 = smov 128  }
  0x14   : > { %p1372_p4 = pneg %p1815_p3  ;;  %s2090_s19 = smov 8  }
  0x15   : > { %s1731_s20 = smov [#allocation12]   ;;  %s2102_s6 = sld [smem:[#allocation27_spill]] }
  0x16   : > { %s252_s10 = sshll.u32 %s2098_s4, 4  ;;  %p1823_p5 = pnand %p1372_p4, %p86_p1  ;;  %s253_s10 = int_to_ptr.hbm [resolvable:$true] %s252_s10 }
  0x17   : > { %s268_s21 = sshll.u32 %s1731_s20, 4  ;;  %s1732_s9 = smov [#allocation14]   ;;  %s269_s21 = int_to_ptr.vmem [resolvable:$true] %s268_s21 }
  0x18   : > { %1375 = dma.hbm_to_vmem [thread:$0]  (!%p1823_p5), %s253_s10, 512, %s255_s13, [#allocation10], %s2089_s18, %s2089_s18, %s2090_s19  }
  0x19   : > { %s266_s17 = sshll.u32 %s2101_s5, 4  ;;  %s282_s10 = sshll.u32 %s1732_s9, 4  ;;  %s267_s17 = int_to_ptr.hbm [resolvable:$true] %s266_s17  ;;  %s283_s10 = int_to_ptr.vmem [resolvable:$true] %s282_s10 }
  0x1a   : > { %1378 = dma.hbm_to_vmem [thread:$0]  (!%p1823_p5), %s267_s17, 512, %s269_s21, [#allocation13], %s2089_s18, %s2089_s18, %s2090_s19  }
  0x1b   : > { %s280_s8 = sshll.u32 %s2102_s6, 4  ;;  %s1302_s12 = sadd.s32 4294967294, %s1726_s29   ;;  %s281_s8 = int_to_ptr.hbm [resolvable:$true] %s280_s8 }
  0x1c   : > { %1381 = dma.hbm_to_vmem [thread:$0]  (!%p1823_p5), %s281_s8, 512, %s283_s10, [#allocation13], %s2089_s18, %s2089_s18, %s2090_s19  }
  0x1d   : > { %s39_s13 = sadd.s32 1, %s1722_s28  ;;  %s72_s15 = sadd.s32 1, %s1714_s26 }
  0x1e   : > { %p41_p7 = scmp.ge.s32.totalorder %s39_s13, 2  ;;  %p79_p8 = scmp.ne.s32.totalorder %s1714_s26, %s1710_s25 }
  0x1f   : > { %p80_p9 = scmp.eq.s32.totalorder %s1726_s29, 0  ;;  %p85_p10 = scmp.ne.s32.totalorder %s1710_s25, %s1706_s24 }
  0x20   : > { %s2121_s13 = smov (%p41_p7, %s39_s13), 0  ;;  %p228_p13 = scmp.eq.s32.totalorder %s1807_s30, 1 }
  0x21   : > { %2103 = sst [smem:[#allocation22_spill]] %s2121_s13  ;;  %p1859_p11 = por %p80_p9, %p79_p8 }
  0x22   : > { %p1865_p12 = por %p86_p1, %p85_p10  ;;  %s69_s17 = ssub.s32 %s1722_s28, %s2121_s13 }
  0x23   : > { %p70_p0 = scmp.eq.s32.totalorder %s69_s17, 0  ;;  %p234_p2 = scmp.eq.s32.totalorder %s1302_s12, 1 }
  0x24   : > { %p1872_p4 = por %p228_p13, %p79_p8  ;;  %p1396_p5 = scmp.lt.s32.totalorder %s1726_s29, 2 }
  0x25   : > { %s1878_s21 = scalar_select %p70_p0, %s1714_s26, %s72_s15  }
  0x26   : > { %p1880_p7 = por %p234_p2, %p85_p10  ;;  %s303_s23 = sand.u32 1, %s1714_s26  }
  0x27   : > { %2107 = sst [smem:[#allocation23_spill]] %s1878_s21  ;;  %s1308_s8 = sshll.u32 %s303_s23, 3 }
  0x28   : > { %s1309_s9 = sshll.u32 %s1722_s28, 3  ;;  %s2109_s1 = sld [smem:[#allocation24_spill]] }
  0x29   : > { %s307_s17 = scalar_lea.vmem [#allocation6], %s1308_s8  ;;  %p1891_p8 = pnand %p1396_p5, %p1859_p11 }
  0x2a   : > { %s316_s19 = sshll.u32 %s307_s17, 4  ;;  %s1310_s6 = sshll.u32 %s303_s23, 6  ;;  %s317_s19 = int_to_ptr.vmem [resolvable:$true] %s316_s19 }
  0x2b   : > { %s304_s13 = scalar_lea.sflag [#allocation7], %s303_s23  ;;  %s327_s18 = scalar_lea.vmem [#allocation9], %s1310_s6 }
  0x2c   : > { %s336_s10 = sshll.u32 %s327_s18, 4  ;;  %s1353_s8 = sshll.u32 %s1722_s28, 6  ;;  %s337_s10 = int_to_ptr.vmem [resolvable:$true] %s336_s10 }
  0x2d   : > { %s2111_s21 = smov 8   ;;  %s2112_s26 = smov 128  }
  0x2e   : > { %s1176_s12 = scalar_lea.hbm %s2109_s1, %s1309_s9  ;;  %s323_s9 = sand.u32 1, %s1726_s29  }
  0x2f   : > { %s1177_s4 = scalar_lea.hbm %s1176_s12, 16  ;;  %s324_s1 = scalar_lea.sflag [#allocation10], %s323_s9 }
  0x30   : > { %s314_s5 = sshll.u32 %s1177_s4, 4  ;;  %s333_s4 = scalar_lea.hbm %s2083_s2, %s1353_s8  ;;  %s315_s5 = int_to_ptr.hbm [resolvable:$true] %s314_s5 }
  0x31   : > { %1385 = dma.hbm_to_vmem [thread:$0]  (!%p1891_p8), %s315_s5, 128, %s317_s19, %s304_s13  }
  0x32   : > { %s334_s14 = sshll.u32 %s333_s4, 4  ;;  %358 = sbr.rel (%p1815_p3) target bundleno = 988 (0x3dc), region = 48  ;;  %s335_s14 = int_to_ptr.hbm [resolvable:$true] %s334_s14 }
  0x33   : > { %1388 = dma.hbm_to_vmem [thread:$0]  (!%p1891_p8), %s335_s14, 1024, %s337_s10, %s324_s1, %s2112_s26, %s2112_s26, %s2111_s21  }
  0x34   : > { %s1910_s5 = sand.u32 (!%p1815_p3), 1, %s1710_s25  }
  0x35   : > { %s1314_s6 = sshll.u32 (!%p1815_p3), %s1910_s5, 3  ;;  %s361_s19 = scalar_lea.sflag (!%p1815_p3), [#allocation7], %s1910_s5 }
  0x36   : > { %s364_s13 = scalar_lea.vmem (!%p1815_p3), [#allocation6], %s1314_s6 }
  0x37   : > { %1685 = dma.done.wait (%p1865_p12), %s361_s19, 128  }
  0x38   : > { %1687 = vsyncadd (%p1865_p12), %s361_s19, 4294967168  ;;  %s370_s1 = sand.u32 1, %s1807_s30   ;;  %s1315_s26 = sshll.u32 %s1910_s5, 6 }
  0x39   : > { %s371_s11 = scalar_lea.sflag [#allocation10], %s370_s1  ;;  %s1922_s21 = scalar_lea.vmem [#allocation9], %s1315_s26 }
  0x3a   : > { %1689 = dma.done.wait (%p1865_p12), %s371_s11, 1024  }
  0x3b   : > { %1691 = vsyncadd (%p1865_p12), %s371_s11, 4294966272 }
  0x3c   : > { %1693 = dma.done.wait (%p86_p1), [#allocation10], 512  }
  0x3d   : > { %1695 = vsyncadd (%p86_p1), [#allocation10], 4294966784 }
  0x3e   : > { %1697 = dma.done.wait (%p86_p1), [#allocation13], 1024  }
  0x3f   : > { %1699 = vsyncadd (%p86_p1), [#allocation13], 4294966272  ;;  %v457_v0 = vld [vmem:[#allocation11 + $0x18] sm:$0xff]  ;;  %v456_v1 = vld [vmem:[#allocation11 + $0x10] sm:$0xff]  ;;  %vm458_vm0 = vcmask 261120   ;;  %p437_p1 = scmp.lt.s32.totalorder %s1718_s27, 1 }
  0x40   : > { %474 = vmatpush.msra.mxu0 %v457_v0  ;;  %v455_v2 = vld [vmem:[#allocation11 + $0x8] sm:$0xff]  ;;  %v454_v3 = vld [vmem:[#allocation11] sm:$0xff]  ;;  %v453_v4 = vld [vmem:[%s364_s13] sm:$0xff]  ;;  %vm483_vm1 = vcmask 7168   ;;  %v1733_v22 = vmov -inf   ;;  %vm742_vm2 = vcmask 1041409  }
  0x41   : > { %v487_v5 = vld [vmem:[%s1922_s21] sm:$0xff]  ;;  %v488_v6 = vld [vmem:[%s1922_s21 + $0x8] sm:$0xff]  ;;  %v489_v7 = vld [vmem:[%s1922_s21 + $0x10] sm:$0xff]  ;;  %s1964_s30 = scalar_select %p437_p1, %s1718_s27, 1  ;;  %484 = vst.msk [vmem:[#allocation3] sm:$0xff] %vm483_vm1, %v1733_v22  ;;  %vm745_vm3 = vcmask 1042434  }
  0x42   : > { %475 = vmatpush.msra.mxu0 %v456_v1  ;;  %1323 = vmatpush.xpose.msk.msra.mxu1 %vm458_vm0, %v487_v5  ;;  %v493_v8 = vld [vmem:[%s1922_s21 + $0x30] sm:$0xff]  ;;  %v491_v9 = vld [vmem:[%s1922_s21 + $0x20] sm:$0xff]  ;;  %v490_v10 = vld [vmem:[%s1922_s21 + $0x18] sm:$0xff]  ;;  %vm748_vm4 = vcmask 1043459   ;;  %vm751_vm5 = vcmask 1044484   ;;  %vm754_vm6 = vcmask 1045509  }
  0x43   : > { %1325 = vmatpush.xpose.msk.msra.mxu2 %vm458_vm0, %v488_v6  ;;  %1327 = vmatpush.xpose.msk.msra.mxu3 %vm458_vm0, %v489_v7  ;;  %v492_v11 = vld [vmem:[%s1922_s21 + $0x28] sm:$0xff]  ;;  %v494_v13 = vld [vmem:[%s1922_s21 + $0x38] sm:$0xff]  ;;  %s1320_s16 = sshll.u32 %s1964_s30, 3  ;;  %vm757_vm7 = vcmask 1046534   ;;  %vm760_vm8 = vcmask 1047559   ;;  %vm763_vm9 = vcmask 64512  }
  0x44   : > { %476 = vmatpush.msra.mxu0 %v455_v2  ;;  %s448_s18 = scalar_lea.vmem %s2084_s3, %s1320_s16  ;;  %v1734_v0 = vmov 0   ;;  %v1735_v1 = vmov 0.0   ;;  %s440_s8 = scalar_lea.vmem %s2081_s0, %s1320_s16 }
  0x45   : > { %v705_v23 = vld [vmem:[%s448_s18] sm:$0xff]  ;;  %1457 = vset.pattern.permute.xlu0 %v1734_v0  ;;  %1458 = vset.pattern.permute.xlu1 %v1734_v0  ;;  %485 = vst.msk [vmem:[#allocation4] sm:$0xff] %vm483_vm1, %v1735_v1  ;;  %s1350_s12 = sshll.u32 %s1718_s27, 3  ;;  %s436_s19 = scalar_lea.vmem [#allocation15], %s1314_s6 }
  0x46   : > { %477 = vmatpush.msra.mxu0 %v454_v3  ;;  %1329 = vmatpush.xpose.msk.msrb.mxu1 %vm458_vm0, %v490_v10  ;;  %v706_v24 = vsub.f32 1.0, %v705_v23  ;;  %486 = vst.msk [vmem:[#allocation5] sm:$0xff] %vm458_vm0, %v1735_v1  ;;  %s1137_s14 = scalar_lea.hbm %s2088_s7, %s1350_s12  ;;  %s1139_s13 = sshll.u32 %s436_s19, 4  ;;  %s1140_s13 = int_to_ptr.vmem [resolvable:$true] %s1139_s13 }
  0x47   : > { %1322 = vmatmul.msk.f32.vlgmr.msra.gmra.mxu0 %vm458_vm0, %v453_v4  ;;  %1331 = vmatpush.xpose.msk.msrb.mxu2 %vm458_vm0, %v491_v9  ;;  %s1141_s1 = sshll.u32 %s1137_s14, 4  ;;  %s1127_s26 = scalar_lea.sflag [#allocation8], %s1910_s5  ;;  %s1142_s1 = int_to_ptr.hbm [resolvable:$true] %s1141_s1 }
  0x48   : > { %1335 = vmatpush.xpose.msk.msrb.mxu0 %vm458_vm0, %v493_v8  ;;  %1333 = vmatpush.xpose.msk.msrb.mxu3 %vm458_vm0, %v492_v11  ;;  %v707_v26 = vmul.f32 1e+20, %v706_v24  ;;  %v1992_v2 = vld [vmem:[#allocation3] sm:$0xff]  ;;  %s1646_s11 = sshra.s32 %s1142_s1, 4  ;;  %s1652_s16 = scalar_lea.hbm %s2088_s7, 16  ;;  %s1647_s11 = int_to_ptr.hbm [resolvable:$true] %s1646_s11 }
  0x49   : > { %1459 = vset.pattern.permute.xlu2 %v1734_v0  ;;  %s1648_s27 = scalar_lea.hbm %s1647_s11, 8  ;;  %p1653_p11 = scmp.lt.s32.totalorder %s1647_s11, %s2088_s7 }
  0x4a   : > { %v709_v27 = vrot.slane %v707_v26, 1  ;;  %v710_v28 = vrot.slane %v707_v26, 2  ;;  %v711_v34 = vrot.slane %v707_v26, 3  ;;  %v714_v37 = vrot.slane %v707_v26, 6  ;;  %p1649_p3 = scmp.ne.s32.totalorder %s1647_s11, %s1648_s27  ;;  %p1654_p12 = scmp.lt.s32.totalorder %s1652_s16, %s1648_s27 }
  0x4b   : > { %v712_v39 = vrot.slane %v707_v26, 4  ;;  %v713_v40 = vrot.slane %v707_v26, 5  ;;  %v715_v44 = vrot.slane %v707_v26, 7 }
  0x4c   : > { %906 = vmatpush.msra.mxu0 %v489_v7  ;;  %p1650_p9 = pnand %p1649_p3, %p1872_p4  ;;  %p1655_p13 = por %p1654_p12, %p1653_p11 }
  0x4e   : > { %p1651_p10 = pneg %p1650_p9 }
  0x50   : > { %p1656_p0 = pnand %p1655_p13, %p1651_p10 }
  0xc4   : > { %v479_v12 = vpop.f32.mrf.mxu0 }
  0xc5   : > { %482 = vst.msk [vmem:[#allocation2] sm:$0xff] %vm458_vm0, %v479_v12 }
  0xcc   : > { %v495_v14 = vld [vmem:[#allocation2] sm:$0xff] }
  0xcd   : > { %1324 = vmatmul.msk.f32.vlgmr.msra.gmra.mxu1 %vm458_vm0, %v495_v14  ;;  %v497_v15 = vrot.slane %v495_v14, 1  ;;  %v498_v16 = vrot.slane %v495_v14, 2  ;;  %v502_v17 = vrot.slane %v495_v14, 6  ;;  %v499_v18 = vrot.slane %v495_v14, 3 }
  0xce   : > { %1337 = vmatpush.xpose.msk.msra.mxu1 %vm458_vm0, %v494_v13  ;;  %v500_v19 = vrot.slane %v495_v14, 4  ;;  %v501_v20 = vrot.slane %v495_v14, 5  ;;  %v503_v21 = vrot.slane %v495_v14, 7 }
  0xcf   : > { %1326 = vmatmul.msk.f32.vlgmr.msra.gmra.mxu2 %vm458_vm0, %v497_v15  ;;  %1328 = vmatmul.msk.f32.vlgmr.msra.gmra.mxu3 %vm458_vm0, %v498_v16 }
  0xd0   : > { %1336 = vmatmul.msk.f32.vlgmr.msrb.gmra.mxu0 %vm458_vm0, %v502_v17  ;;  %862 = vmatpush.msra.mxu2 %v487_v5 }
  0xd1   : > { %884 = vmatpush.msra.mxu3 %v488_v6  ;;  %994 = vmatpush.msrb.mxu0 %v493_v8 }
  0xd5   : > { %1330 = vmatmul.msk.f32.vlgmr.msrb.gmra.mxu1 %vm458_vm0, %v499_v18 }
  0xd6   : > { %928 = vmatpush.msrb.mxu1 %v490_v10 }
  0xd7   : > { %1332 = vmatmul.msk.f32.vlgmr.msrb.gmra.mxu2 %vm458_vm0, %v500_v19  ;;  %1334 = vmatmul.msk.f32.vlgmr.msrb.gmra.mxu3 %vm458_vm0, %v501_v20 }
  0xd8   : > { %950 = vmatpush.msrb.mxu2 %v491_v9  ;;  %972 = vmatpush.msrb.mxu3 %v492_v11 }
  0xdd   : > { %1338 = vmatmul.msk.f32.vlgmr.msra.gmra.mxu1 %vm458_vm0, %v503_v21 }
  0xde   : > { %1016 = vmatpush.msra.mxu1 %v494_v13 }
 0x14a   : > { %v527_v25 = vpop.f32.mrf.mxu1 }
 0x14b   : > { %v1978_v36 = vsub.f32 %v527_v25, %v707_v26 }
 0x14d   : > { %v677_v41 = vpop.f32.mrf.mxu0 }
 0x14e   : > { %v730_v47 = vsub.f32 %v677_v41, %v714_v37 }
 0x150   : > { %v756_v57 = vrot.slane %v730_v47, 2 }
 0x152   : > { %v552_v29 = vpop.f32.mrf.mxu2  ;;  %v577_v30 = vpop.f32.mrf.mxu3 }
 0x153   : > { %v1973_v31 = vsub.f32 %v552_v29, %v709_v27  ;;  %v1975_v32 = vsub.f32 %v577_v30, %v710_v28  ;;  %v602_v33 = vpop.f32.mrf.mxu1 }
 0x154   : > { %v727_v43 = vsub.f32 %v602_v33, %v711_v34 }
 0x155   : > { %v741_v35 = vrot.slane %v1973_v31, 7  ;;  %v744_v38 = vrot.slane %v1975_v32, 6 }
 0x156   : > { %v747_v52 = vrot.slane %v727_v43, 5 }
 0x157   : > { %v743_v42 = vsel %vm742_vm2, %v741_v35, %v1978_v36 }
 0x158   : > { %v746_v48 = vsel %vm745_vm3, %v744_v38, %v743_v42 }
 0x159   : > { %v749_v56 = vsel %vm748_vm4, %v747_v52, %v746_v48 }
 0x15a   : > { %v627_v45 = vpop.f32.mrf.mxu2  ;;  %v652_v46 = vpop.f32.mrf.mxu3 }
 0x15b   : > { %v728_v49 = vsub.f32 %v627_v45, %v712_v39  ;;  %v729_v50 = vsub.f32 %v652_v46, %v713_v40  ;;  %v702_v51 = vpop.f32.mrf.mxu1 }
 0x15c   : > { %v731_v53 = vsub.f32 %v702_v51, %v715_v44 }
 0x15d   : > { %v750_v54 = vrot.slane %v728_v49, 4  ;;  %v753_v55 = vrot.slane %v729_v50, 3 }
 0x15e   : > { %v759_v59 = vrot.slane %v731_v53, 1 }
 0x15f   : > { %v752_v58 = vsel %vm751_vm5, %v750_v54, %v749_v56  ;;  %v1077_v56 = vld [vmem:[#allocation14 + $0x18] sm:$0xff] }
 0x160   : > { %v755_v60 = vsel %vm754_vm6, %v753_v55, %v752_v58  ;;  %v814_v55 = vld [vmem:[#allocation4] sm:$0xff]  ;;  %v1076_v58 = vld [vmem:[#allocation14 + $0x10] sm:$0xff] }
 0x161   : > { %v758_v61 = vsel %vm757_vm7, %v756_v57, %v755_v60  ;;  %v1073_v57 = vld [vmem:[#allocation12 + $0x18] sm:$0xff] }
 0x162   : > { %v761_v62 = vsel %vm760_vm8, %v759_v59, %v758_v61  ;;  %v1072_v59 = vld [vmem:[#allocation12 + $0x10] sm:$0xff]  ;;  %v1075_v61 = vld [vmem:[#allocation14 + $0x8] sm:$0xff] }
 0x163   : > { %v764_v63 = vsel %vm763_vm9, %v761_v62, -inf  ;;  %v1071_v62 = vld [vmem:[#allocation12 + $0x8] sm:$0xff] }
 0x164   : > { %765 = vmax.xlane.f32.xlu0 %v764_v63 }
 0x1d7   : > { %v766_v3 = vpop.xlane.xlu0 %765 }
 0x1d8   : > { %v1995_v4 = vmax.f32 %v1992_v2, %v766_v3 }
 0x1da   : > { %v768_v5 = vsub.f32 %v1992_v2, %v1995_v4  ;;  %1053 = vst.msk [vmem:[#allocation3] sm:$0xff] %vm483_vm1, %v1995_v4  ;;  %773 = vperm.xlu0 %1457, %v1995_v4  }
 0x24c   : > { %v774_v6 = vpop.permute.xlu0 %773 }
 0x24d   : > { %v775_v7 = vrot.slane %v774_v6, 1  ;;  %v776_v8 = vrot.slane %v774_v6, 2  ;;  %v777_v9 = vrot.slane %v774_v6, 3  ;;  %v778_v10 = vrot.slane %v774_v6, 4 }
 0x24e   : > { %v779_v11 = vrot.slane %v774_v6, 5  ;;  %v780_v12 = vrot.slane %v774_v6, 6  ;;  %v781_v13 = vrot.slane %v774_v6, 7  ;;  %v790_v14 = vsub.f32 %v1978_v36, %v774_v6 }
 0x24f   : > { %v791_v15 = vsub.f32 %v1973_v31, %v775_v7  ;;  %v792_v16 = vsub.f32 %v1975_v32, %v776_v8  ;;  %v793_v17 = vsub.f32 %v727_v43, %v777_v9  ;;  %v794_v18 = vsub.f32 %v728_v49, %v778_v10 }
 0x250   : > { %v795_v19 = vsub.f32 %v729_v50, %v779_v11  ;;  %v796_v20 = vsub.f32 %v730_v47, %v780_v12  ;;  %v798_v21 = vmul.f32 1.442695, %v790_v14  ;;  %v797_v22 = vsub.f32 %v731_v53, %v781_v13 }
 0x251   : > { %v800_v23 = vmul.f32 1.442695, %v791_v15  ;;  %v802_v24 = vmul.f32 1.442695, %v792_v16  ;;  %v804_v25 = vmul.f32 1.442695, %v793_v17 }
 0x252   : > { %1460 = vpow2.f32 %v798_v21  ;;  %v806_v26 = vmul.f32 1.442695, %v794_v18  ;;  %v808_v27 = vmul.f32 1.442695, %v795_v19  ;;  %v810_v28 = vmul.f32 1.442695, %v796_v20 }
 0x253   : > { %1462 = vpow2.f32 %v800_v23  ;;  %v812_v29 = vmul.f32 1.442695, %v797_v22  ;;  %v769_v53 = vmul.f32 1.442695, %v768_v5 }
 0x254   : > { %1464 = vpow2.f32 %v802_v24  ;;  %v1021_v24 = vld [vmem:[#allocation5] sm:$0xff] }
 0x255   : > { %1466 = vpow2.f32 %v804_v25 }
 0x256   : > { %1468 = vpow2.f32 %v806_v26 }
 0x257   : > { %1470 = vpow2.f32 %v808_v27 }
 0x258   : > { %v1461_v30 = vpop.eup %1460  ;;  %1472 = vpow2.f32 %v810_v28 }
 0x259   : > { %v1463_v31 = vpop.eup %1462  ;;  %1474 = vpow2.f32 %v812_v29  ;;  %1339 = vmatmul.msk.f32.vlgmr.msra.gmra.mxu2 %vm763_vm9, %v1461_v30 }
 0x25a   : > { %v1465_v32 = vpop.eup %1464  ;;  %1340 = vmatmul.msk.f32.vlgmr.msra.gmra.mxu3 %vm763_vm9, %v1463_v31  ;;  %v824_v33 = vrot.slane %v1463_v31, 7  ;;  %1476 = vpow2.f32 %v769_v53  ;;  %1093 = vmatpush.msra.mxu2 %v1077_v56 }
 0x25b   : > { %v1467_v34 = vpop.eup %1466  ;;  %1341 = vmatmul.msk.f32.vlgmr.msra.gmra.mxu0 %vm763_vm9, %v1465_v32  ;;  %v826_v35 = vrot.slane %v1465_v32, 6  ;;  %1116 = vmatpush.msra.mxu3 %v1073_v57  ;;  %v1074_v32 = vld [vmem:[#allocation14] sm:$0xff] }
 0x25c   : > { %v1469_v36 = vpop.eup %1468  ;;  %1342 = vmatmul.msk.f32.vlgmr.msrb.gmra.mxu1 %vm763_vm9, %v1467_v34  ;;  %v825_v37 = vsel %vm742_vm2, %v824_v33, %v1461_v30  ;;  %v828_v38 = vrot.slane %v1467_v34, 5  ;;  %1094 = vmatpush.msra.mxu2 %v1076_v58  ;;  %v1070_v33 = vld [vmem:[#allocation12] sm:$0xff]  ;;  %v1069_v34 = vld [vmem:[%s440_s8] sm:$0xff] }
 0x25d   : > { %v1471_v39 = vpop.eup %1470  ;;  %v827_v40 = vsel %vm745_vm3, %v826_v35, %v825_v37  ;;  %v830_v41 = vrot.slane %v1469_v36, 4  ;;  %1117 = vmatpush.msra.mxu3 %v1072_v59 }
 0x25e   : > { %v1473_v42 = vpop.eup %1472  ;;  %v829_v43 = vsel %vm748_vm4, %v828_v38, %v827_v40  ;;  %v832_v44 = vrot.slane %v1471_v39, 3  ;;  %1095 = vmatpush.msra.mxu2 %v1075_v61 }
 0x25f   : > { %v1475_v45 = vpop.eup %1474  ;;  %v831_v46 = vsel %vm751_vm5, %v830_v41, %v829_v43  ;;  %v834_v47 = vrot.slane %v1473_v42, 2  ;;  %1118 = vmatpush.msra.mxu3 %v1071_v62 }
 0x260   : > { %v833_v48 = vsel %vm754_vm6, %v832_v44, %v831_v46  ;;  %v836_v49 = vrot.slane %v1475_v45, 1  ;;  %v1477_v54 = vpop.eup %1476  ;;  %1096 = vmatpush.msra.mxu2 %v1074_v32 }
 0x261   : > { %1343 = vmatmul.msk.f32.vlgmr.msrb.gmra.mxu2 %vm763_vm9, %v1469_v36  ;;  %v835_v50 = vsel %vm757_vm7, %v834_v47, %v833_v48  ;;  %v815_v60 = vmul.f32 %v1477_v54, %v814_v55  ;;  %1119 = vmatpush.msra.mxu3 %v1070_v33 }
 0x262   : > { %1344 = vmatmul.msk.f32.vlgmr.msrb.gmra.mxu3 %vm763_vm9, %v1471_v39  ;;  %v837_v51 = vsel %vm760_vm8, %v836_v49, %v835_v50 }
 0x263   : > { %1345 = vmatmul.msk.f32.vlgmr.msrb.gmra.mxu0 %vm763_vm9, %v1473_v42  ;;  %v839_v52 = vsel %vm763_vm9, %v837_v51, 0.0 }
 0x264   : > { %1346 = vmatmul.msk.f32.vlgmr.msra.gmra.mxu1 %vm763_vm9, %v1475_v45  ;;  %840 = vadd.xlane.f32.xlu1 %v839_v52 }
 0x26a   : > { %1348 = vmatmul.msk.f32.vlgmr.msra.gmra.mxu3 %vm458_vm0, %v1069_v34 }
 0x27d   : > { %1024 = vperm.xlu1 %1458, %v1477_v54  }
 0x2d7   : > { %v841_v63 = vpop.xlane.xlu1 %840 }
 0x2d8   : > { %v842_v0 = vadd.f32 %v841_v63, %v815_v60  ;;  %v908_v4 = vpop.f32.mrf.mxu0 }
 0x2d9   : > { %v1038_v7 = vrot.slane %v908_v4, 6  ;;  %v930_v8 = vpop.f32.mrf.mxu1 }
 0x2da   : > { %844 = vst.msk [vmem:[#allocation4] sm:$0xff] %vm483_vm1, %v842_v0  ;;  %v1040_v11 = vrot.slane %v930_v8, 5 }
 0x2dc   : > { %v864_v1 = vpop.f32.mrf.mxu2 }
 0x2dd   : > { %v886_v2 = vpop.f32.mrf.mxu3 }
 0x2de   : > { %v1036_v3 = vrot.slane %v886_v2, 7 }
 0x2e0   : > { %v1037_v5 = vsel %vm742_vm2, %v1036_v3, %v864_v1  ;;  %v996_v18 = vpop.f32.mrf.mxu0 }
 0x2e1   : > { %v1057_v6 = vld [vmem:[#allocation4] sm:$0xff]  ;;  %v1039_v9 = vsel %vm745_vm3, %v1038_v7, %v1037_v5  ;;  %v1046_v22 = vrot.slane %v996_v18, 2  ;;  %v1018_v23 = vpop.f32.mrf.mxu1 }
 0x2e2   : > { %1478 = vrcp.f32 %v1057_v6  ;;  %v1041_v14 = vsel %vm748_vm4, %v1040_v11, %v1039_v9  ;;  %v1048_v27 = vrot.slane %v1018_v23, 1 }
 0x2e4   : > { %v952_v10 = vpop.f32.mrf.mxu2 }
 0x2e5   : > { %v1042_v12 = vrot.slane %v952_v10, 4  ;;  %v974_v13 = vpop.f32.mrf.mxu3 }
 0x2e6   : > { %v1044_v15 = vrot.slane %v974_v13, 3 }
 0x2e7   : > { %v1043_v17 = vsel %vm751_vm5, %v1042_v12, %v1041_v14 }
 0x2e8   : > { %v1479_v16 = vpop.eup %1478  ;;  %v1045_v20 = vsel %vm754_vm6, %v1044_v15, %v1043_v17 }
 0x2e9   : > { %v1059_v19 = vmul.f32 %v1479_v16, %v1057_v6  ;;  %v1047_v26 = vsel %vm757_vm7, %v1046_v22, %v1045_v20 }
 0x2ea   : > { %v1049_v30 = vsel %vm760_vm8, %v1048_v27, %v1047_v26 }
 0x2eb   : > { %v1060_v21 = vsub.f32 2.0, %v1059_v19 }
 0x2ed   : > { %v1061_v25 = vmul.f32 %v1479_v16, %v1060_v21  ;;  %v1121_v38 = vpop.f32.mrf.mxu3 }
 0x2ef   : > { %v1025_v28 = vpop.permute.xlu1 %1024  ;;  %1065 = vperm.xlu2 %1459, %v1061_v25  }
 0x2f0   : > { %v1027_v29 = vmul.f32 %v1025_v28, %v1021_v24 }
 0x2f2   : > { %v1051_v31 = vadd.f32 %v1049_v30, %v1027_v29 }
 0x2f4   : > { %1052 = vst.msk [vmem:[#allocation5] sm:$0xff] %vm458_vm0, %v1051_v31 }
 0x2fb   : > { %v1062_v35 = vld [vmem:[#allocation5] sm:$0xff] }
 0x349   : > { %v1066_v36 = vpop.permute.xlu2 %1065 }
 0x34a   : > { %v1068_v37 = vmul.f32 %v1066_v36, %v1062_v35 }
 0x34c   : > { %1347 = vmatmul.msk.f32.vlgmr.msra.gmra.mxu2 %vm458_vm0, %v1068_v37 }
 0x3cf   : > { %v1098_v39 = vpop.f32.mrf.mxu2 }
 0x3d0   : > { %v1122_v40 = vadd.f32 %v1121_v38, %v1098_v39 }
 0x3d2   : > { %1480 = vtanh.f32 %v1122_v40 }
 0x3d8   : > { %v1481_v41 = vpop.eup %1480 }
 0x3d9   : > { %1125 = vst.msk [vmem:[%s436_s19] sm:$0xff] %vm458_vm0, %v1481_v41 }
 0x3da   : > { %1659 = shalt.err (!%p1656_p0)
}
 0x3db   : > { %1370 = dma.vmem_to_hbm [thread:$0]  (%p1872_p4), %s1140_s13, 128, %s1142_s1, %s1127_s26  }
 0x3dc PF: > { %s1153_s5 = sand.u32 1, %s1706_s24   ;;  %p1390_p2 = pnand %p1307_p6, %p1880_p7 }
 0x3dd   : > { %s1154_s15 = scalar_lea.sflag [#allocation8], %s1153_s5 }
 0x3de   : > { %p1391_p5 = pneg %p1390_p2 }
 0x3e0   : > { %1701 = dma.done.wait (%p1391_p5), %s1154_s15, 128  }
 0x3e1   : > { %1703 = vsyncadd (%p1391_p5), %s1154_s15, 4294967168  ;;  %s27_s29 = sadd.s32 1, %s1726_s29   ;;  %s2113_s18 = sld [smem:[#allocation21_spill]] }
 0x3e2   : > { %p24_p8 = scmp.ge.s32.totalorder %s27_s29, 4   ;;  %s2114_s26 = sld [smem:[#allocation23_spill]] }
 0x3e3   : > { %s2115_s20 = sld [smem:[#allocation22_spill]]  ;;  %s2116_s24 = smov %s1710_s25 }
 0x3e4   : > { %s2118_s27 = smov %s1722_s28 }
 0x3e5   :  { %26 = sbr.rel (!%p24_p8) target bundleno = 14 (0xe), region = 132 }
 0x3e7   : > { %s2117_s25 = smov %s2113_s18 }
 0x3e9   : > { %s2119_s28 = smov %s2115_s20 }
 0x3ea   :  { %1160 = vsyncpa [#allocation7], 1 }
 0x3eb   :  { %1162 = vsyncpa [#allocation7 + $0x1], 1 }
 0x3ec   :  { %1163 = vsyncpa [#allocation10], 1 }
 0x3ed   :  { %1165 = vsyncpa [#allocation10 + $0x1], 1 }
 0x3ee   :  { %1166 = vsyncpa [#allocation13], 1 }
 0x3ef   :  { %1167 = vsyncpa [#allocation8], 1 }
 0x3f0   :  { %1169 = vsyncpa [#allocation8 + $0x1], 1 }

</bundles_post_ra>
